<compile_context>
chip_gen: v7x
topology: tpu7x:2x2x1
jax: 0.10.0
libtpu: 0.0.40
codegen_flags: <defaults>
</compile_context>

<pallas_src>
import jax
import jax.numpy as jnp
from jax.experimental import pallas as pl
from jax.experimental.pallas import tpu as pltpu

LANES = 128


def _c2relu_kernel(x_ref, o_ref):
    # Upcast to f32 for the polynomial; cast back only at the store.
    x = x_ref[...].astype(jnp.float32)
    z = jnp.maximum(x + 0.5, 0.0)     # relu(x + 0.5)
    y = jnp.maximum(x, 0.0)           # relu(x)
    z2 = z * z
    z3 = z2 * z
    z4 = z2 * z2
    poly = z3 - 0.5 * z4              # -0.5 * z^4 + z^3
    o_ref[...] = jnp.maximum(poly, y).astype(o_ref.dtype)


def c2relu(x: jax.Array, *, tile_rows: int = 4096) -> jax.Array:
    """Elementwise C2ReLU.  Accepts any shape (NCHW expected); preserves shape/dtype."""
    orig_shape = x.shape
    orig_dtype = x.dtype

    flat = x.reshape(-1)
    n = flat.shape[0]

    # Pad ONLY if the element count is not a multiple of the lane width (128).
    # Most NCHW activations are already multiples of 1024, so this path (and
    # the matching unpad slice below) is usually skipped entirely -> no extra
    # HBM read/write beyond the kernel's own traffic.
    n_pad = (-n) % LANES
    if n_pad:
        flat = jnp.pad(flat, (0, n_pad))
    rows = (n + n_pad) // LANES
    slab = flat.reshape(rows, LANES)

    # Tile selection: large fixed tile (multiple of 32 rows for packed dtypes);
    # partial last block is handled by Pallas masking via a cdiv grid.
    if rows <= tile_rows:
        tr = rows                      # single block == full array extent
    else:
        tr = tile_rows
    grid = (pl.cdiv(rows, tr),)

    itemsize = jnp.dtype(orig_dtype).itemsize
    cost = pl.CostEstimate(
        flops=9 * n,
        transcendentals=0,
        bytes_accessed=2 * n * itemsize,
    )

    out_slab = pl.pallas_call(
        _c2relu_kernel,
        out_shape=jax.ShapeDtypeStruct((rows, LANES), orig_dtype),
        grid_spec=pltpu.PrefetchScalarGridSpec(
            num_scalar_prefetch=0,
            grid=grid,
            in_specs=[pl.BlockSpec((tr, LANES), lambda i: (i, 0))],
            out_specs=pl.BlockSpec((tr, LANES), lambda i: (i, 0)),
        ),
        compiler_params=pltpu.CompilerParams(
            dimension_semantics=("parallel",),
        ),
        cost_estimate=cost,
    )(slab)

    out_flat = out_slab.reshape(-1)
    if n_pad:
        out_flat = out_flat[:n]
    return out_flat.reshape(orig_shape)


def _c2relu_ref(x: jax.Array) -> jax.Array:
    xf = x.astype(jnp.float32)
    z = jnp.maximum(xf + 0.5, 0.0)
    y = jnp.maximum(xf, 0.0)
    return jnp.maximum(-0.5 * z**4 + z**3, y).astype(x.dtype)


if __name__ == "__main__":
    key = jax.random.PRNGKey(0)

    # Primary test: NCHW input consistent with an imagenet-resnet activation.
    x = jax.random.normal(key, (2, 4, 16, 16), dtype=jnp.float32)
    out = c2relu(x)
    jax.block_until_ready(out)
    ref = _c2relu_ref(x)
    assert out.shape == x.shape and out.dtype == x.dtype
    assert jnp.allclose(out, ref, atol=1e-6, rtol=1e-6), "mismatch vs reference"

    # Secondary test: ragged element count exercises the pad + masked-tail path.
    k2 = jax.random.split(key, 2)[1]
    x2 = jax.random.normal(k2, (3, 5, 7, 11), dtype=jnp.float32)
    out2 = c2relu(x2)
    jax.block_until_ready(out2)
    assert jnp.allclose(out2, _c2relu_ref(x2), atol=1e-6, rtol=1e-6), "ragged mismatch"

    print("KERNEL_OK")
</pallas_src>

<mosaic_0001>
module attributes {stable_mosaic.version = 11 : i64} {
  func.func @_c2relu_kernel(%arg0: i32, %arg1: memref<16x128xf32, #tpu.memory_space<vmem>>, %arg2: memref<16x128xf32, #tpu.memory_space<vmem>>) attributes {dimension_semantics = [#tpu.dimension_semantics<parallel>], iteration_bounds = array<i64: 1>, scalar_prefetch = 0 : i64, scratch_operands = 0 : i64, tpu.core_type = #tpu.core_type<tc>, window_params = [{transform_indices = @transform_0, window_bounds = array<i64: 16, 128>}, {transform_indices = @transform_1, window_bounds = array<i64: 16, 128>}]} {
    %c0 = arith.constant 0 : index
    %c0_0 = arith.constant 0 : index
    %0 = vector.load %arg1[%c0, %c0_0] : memref<16x128xf32, #tpu.memory_space<vmem>>, vector<16x128xf32>
    %cst = arith.constant 5.000000e-01 : f32
    %1 = vector.broadcast %cst : f32 to vector<16x128xf32>
    %2 = arith.addf %0, %1 : vector<16x128xf32>
    %cst_1 = arith.constant 0.000000e+00 : f32
    %3 = vector.broadcast %cst_1 : f32 to vector<16x128xf32>
    %4 = arith.maximumf %2, %3 : vector<16x128xf32>
    %cst_2 = arith.constant 0.000000e+00 : f32
    %5 = vector.broadcast %cst_2 : f32 to vector<16x128xf32>
    %6 = arith.maximumf %0, %5 : vector<16x128xf32>
    %7 = arith.mulf %4, %4 : vector<16x128xf32>
    %8 = arith.mulf %7, %4 : vector<16x128xf32>
    %9 = arith.mulf %7, %7 : vector<16x128xf32>
    %cst_3 = arith.constant 5.000000e-01 : f32
    %10 = vector.broadcast %cst_3 : f32 to vector<16x128xf32>
    %11 = arith.mulf %10, %9 : vector<16x128xf32>
    %12 = arith.subf %8, %11 : vector<16x128xf32>
    %13 = arith.maximumf %12, %6 : vector<16x128xf32>
    %c0_4 = arith.constant 0 : index
    %c0_5 = arith.constant 0 : index
    %14 = vector.load %arg2[%c0_4, %c0_5] : memref<16x128xf32, #tpu.memory_space<vmem>>, vector<16x128xf32>
    tpu.vector_store %arg2[%c0_4, %c0_5], %13 {strides = array<i32>} : memref<16x128xf32, #tpu.memory_space<vmem>>, vector<16x128xf32>,
    return
  }
  func.func @transform_0(%arg0: i32) -> (i32, i32) {
    %c0_i32 = arith.constant 0 : i32
    %c0_i32_0 = arith.constant 0 : i32
    return %arg0, %c0_i32 : i32, i32
  }
  func.func @transform_1(%arg0: i32) -> (i32, i32) {
    %c0_i32 = arith.constant 0 : i32
    %c0_i32_0 = arith.constant 0 : i32
    return %arg0, %c0_i32 : i32, i32
  }
}

</mosaic_0001>

<bundles_post_ra>
// kernel: tpu_custom_call.1
= control target key start
LH: loop header
LB: loop body
LE: loop exit
PB: predicated region body
PF: predicated region fallthrough
CT: control target
= control target key end

     0   :  { %6 = vsyncpa [#allocation3], 0  ;;  %s158_s0 = inlined_call_operand.hbm [shape: f32[16,128], index: 0, kind: input, shape index: {}]   ;;  %s159_s1 = inlined_call_operand.hbm [shape: f32[16,128], index: 1, kind: output, shape index: {}]  }
   0x1   :  { %7 = vsyncpa [#allocation4], 0  ;;  %s114_s6 = smov [#allocation2]   ;;  %s66_s10 = scalar_lea.hbm %s158_s0, 256 }
   0x2   :  { %s13_s7 = sshll.u32 %s114_s6, 4  ;;  %p67_p0 = scmp.ne.s32.totalorder %s158_s0, %s66_s10  ;;  %s14_s7 = int_to_ptr.vmem [resolvable:$true] %s13_s7 }
   0x3   :  { %p70_p1 = scmp.lt.u32.totalorder %s66_s10, %s158_s0 }
   0x5   :  { %p72_p2 = pnand %p70_p1, %p67_p0 }
   0x7   :  { %75 = shalt.err (!%p72_p2)
}
   0x8   :  { %s76_s15 = scalar_lea.vmem %s14_s7, 256  ;;  %p81_p4 = scmp.lt.s32.totalorder %s14_s7, %s14_s7 }
   0x9   :  { %p77_p3 = scmp.ne.s32.totalorder %s14_s7, %s76_s15  ;;  %p82_p5 = scmp.lt.s32.totalorder %s76_s15, %s76_s15 }
   0xb   :  { %p83_p6 = por %p82_p5, %p81_p4 }
   0xd   :  { %p84_p7 = pnand %p83_p6, %p77_p3 }
   0xf   :  { %87 = shalt.err (!%p84_p7)
}
  0x10   :  { %s115_s16 = smov 128   ;;  %s116_s17 = smov 8  }
  0x11   :  { %19 = dma.hbm_to_vmem [thread:$0]  %s158_s0, 256, %s14_s7, [#allocation3], %s115_s16, %s115_s16, %s116_s17  }
  0x12   :  { %110 = dma.done.wait [#allocation3], 256  }
  0x13   :  { %111 = vsyncadd [#allocation3], 4294967040  ;;  %v23_v0 = vld [vmem:[#allocation2] sm:$0xff]  ;;  %v24_v1 = vld [vmem:[#allocation2 + $0x8] sm:$0xff]  ;;  %s117_s20 = smov [#allocation5]  }
  0x14   :  { %v25_v2 = vadd.f32 0.5, %v23_v0  ;;  %v26_v3 = vadd.f32 0.5, %v24_v1  ;;  %v29_v12 = vmax.f32 %v23_v0, 0.0  ;;  %v30_v14 = vmax.f32 %v24_v1, 0.0  ;;  %s50_s0 = sshll.u32 %s117_s20, 4  ;;  %s51_s0 = int_to_ptr.vmem [resolvable:$true] %s50_s0 }
  0x15   :  { %s88_s21 = scalar_lea.vmem %s51_s0, 256  ;;  %p93_p9 = scmp.lt.s32.totalorder %s51_s0, %s51_s0 }
  0x16   :  { %v27_v4 = vmax.f32 %v25_v2, 0.0  ;;  %v28_v5 = vmax.f32 %v26_v3, 0.0  ;;  %p89_p8 = scmp.ne.s32.totalorder %s51_s0, %s88_s21  ;;  %p94_p10 = scmp.lt.s32.totalorder %s88_s21, %s88_s21 }
  0x18   :  { %v31_v6 = vmul.f32 %v27_v4, %v27_v4  ;;  %v32_v7 = vmul.f32 %v28_v5, %v28_v5  ;;  %p95_p11 = por %p94_p10, %p93_p9 }
  0x1a   :  { %v33_v8 = vmul.f32 %v31_v6, %v27_v4  ;;  %v35_v9 = vmul.f32 %v31_v6, %v31_v6  ;;  %v34_v10 = vmul.f32 %v32_v7, %v28_v5  ;;  %v36_v11 = vmul.f32 %v32_v7, %v32_v7  ;;  %p96_p12 = pnand %p95_p11, %p89_p8 }
  0x1c   :  { %v37_v13 = vmul.f32 0.5, %v35_v9  ;;  %v38_v15 = vmul.f32 0.5, %v36_v11 }
  0x1e   :  { %v39_v16 = vsub.f32 %v33_v8, %v37_v13  ;;  %v40_v17 = vsub.f32 %v34_v10, %v38_v15 }
  0x20   :  { %v41_v18 = vmax.f32 %v39_v16, %v29_v12  ;;  %v42_v19 = vmax.f32 %v40_v17, %v30_v14 }
  0x22   :  { %43 = vst [vmem:[#allocation5] sm:$0xff] %v41_v18  ;;  %44 = vst [vmem:[#allocation5 + $0x8] sm:$0xff] %v42_v19 }
  0x23   :  { %99 = shalt.err (!%p96_p12)
}
  0x24   :  { %s100_s24 = scalar_lea.hbm %s159_s1, 256 }
  0x25   :  { %p101_p13 = scmp.ne.s32.totalorder %s159_s1, %s100_s24  ;;  %p104_p0 = scmp.lt.u32.totalorder %s100_s24, %s159_s1 }
  0x27   :  { %p106_p1 = pnand %p104_p0, %p101_p13 }
  0x29   :  { %109 = shalt.err (!%p106_p1)
}
  0x2a   :  { %56 = dma.vmem_to_hbm [thread:$0]  %s51_s0, 256, %s159_s1, [#allocation4], %s115_s16, %s115_s16, %s116_s17  }
  0x2b   :  { %112 = dma.done.wait [#allocation4], 256  }
  0x2c   :  { %113 = vsyncadd [#allocation4], 4294967040 }
  0x2d   :  { %60 = vsyncpa [#allocation3], 1 }
  0x2e   :  { %61 = vsyncpa [#allocation4], 1 }

</bundles_post_ra>
